<compile_context>
chip_gen: v7x
topology: tpu7x:2x2x1
jax: 0.10.0
libtpu: 0.0.40
codegen_flags: <defaults>
</compile_context>

<pallas_src>
import math

import jax
import jax.numpy as jnp
from jax.experimental import pallas as pl
from jax.experimental.pallas import tpu as pltpu

LANE = 128


def _round_up(n, m):
    return ((n + m - 1) // m) * m


def _cdiv(a, b):
    return -(-a // b)


def mlp_kernel(x_ref, w1_ref, b1_ref, w2_ref, b2_ref, w3_ref, b3_ref, o_ref):
    a_store = o_ref.shape[-1]  # narrow output slab width (e.g. 8)
    # x arrives f32 straight from HBM; bf16 cast on the VPU is hidden under
    # the MXU work (no separate XLA astype pass over x).
    x_bf16 = x_ref[...].astype(jnp.bfloat16)
    # fc1 + ReLU  (bf16 MXU inputs, f32 accumulation, f32 VPU bias/ReLU)
    h1 = jnp.dot(x_bf16, w1_ref[...], preferred_element_type=jnp.float32)
    h1 = jnp.maximum(h1 + b1_ref[...], 0.0)
    # fc2 + ReLU
    h2 = jnp.dot(h1.astype(jnp.bfloat16), w2_ref[...],
                 preferred_element_type=jnp.float32)
    h2 = jnp.maximum(h2 + b2_ref[...], 0.0)
    # fc3 (no activation).  MXU runs at N=128 (w3 lane-padded), but only the
    # first a_store lanes reach HBM -> ~16x less writeback than a 128-wide
    # f32 store; the masked vst is hidden under the fc2 MXU work.
    out = jnp.dot(h2.astype(jnp.bfloat16), w3_ref[...],
                  preferred_element_type=jnp.float32)
    o_ref[...] = (out[:, :a_store] + b3_ref[...]).astype(o_ref.dtype)


def prepare_params(params):
    """One-time pad + cast of the weights/biases (hoisted out of the
    per-call path).  Padded rows/cols/bias entries are zero, so they are
    numerically inert through the matmul/ReLU chain."""
    w1, b1, w2, b2, w3, b3 = (params["w1"], params["b1"], params["w2"],
                              params["b2"], params["w3"], params["b3"])
    S, H = w1.shape
    A = w3.shape[1]
    H_pad = _round_up(H, LANE)      # 200 -> 256 (lane-dense hidden)
    A_mxu = _round_up(A, LANE)      # 4   -> 128 (fc3 MXU width)
    A_store = _round_up(A, 8)       # 4   -> 8   (narrow HBM store width)

    prepped = {
        "w1": jnp.pad(w1, ((0, 0), (0, H_pad - H))).astype(jnp.bfloat16),
        "b1": jnp.pad(b1.reshape(1, H), ((0, 0), (0, H_pad - H))).astype(jnp.float32),
        "w2": jnp.pad(w2, ((0, H_pad - H), (0, H_pad - H))).astype(jnp.bfloat16),
        "b2": jnp.pad(b2.reshape(1, H), ((0, 0), (0, H_pad - H))).astype(jnp.float32),
        "w3": jnp.pad(w3, ((0, H_pad - H), (0, A_mxu - A))).astype(jnp.bfloat16),
        "b3": jnp.pad(b3.reshape(1, A), ((0, 0), (0, A_store - A))).astype(jnp.float32),
    }
    dims = {"num_states": S, "hidden_pad": H_pad, "num_actions": A,
            "a_mxu": A_mxu, "a_store": A_store}
    return prepped, dims


def _choose_batch_tiling(B, max_tile):
    """Adaptive batch tile: multiple of 8, <= max_tile rows, minimal batch
    padding, and >= 2 (even) grid steps whenever B isn't tiny so both v7x
    TensorCores get work."""
    B8 = _round_up(B, 8)
    if B8 <= 32:                       # tiny batch: one small tile
        return B8, B8
    n_tiles = _cdiv(B8, max_tile)
    if n_tiles == 1:
        n_tiles = 2                    # give the second TC something to do
    if n_tiles % 2 == 1:
        n_tiles += 1                   # even steps -> balanced megacore split
    TB = _round_up(_cdiv(B8, n_tiles), 8)
    return TB, TB * n_tiles


def fully_connected_policy_estimator(x, prepped, dims, *, batch_tile=1024):
    """x: [B, num_states] float32.  prepped/dims: from prepare_params()."""
    B, S = x.shape
    assert S == dims["num_states"], (S, dims["num_states"])
    H_pad = dims["hidden_pad"]
    A = dims["num_actions"]
    A_mxu = dims["a_mxu"]
    A_store = dims["a_store"]

    TB, B_pad = _choose_batch_tiling(B, batch_tile)
    grid = (B_pad // TB,)

    # Only pad x when the tiling actually requires it (x stays f32).
    x_p = x if B_pad == B else jnp.pad(x, ((0, B_pad - B), (0, 0)))

    flops = 2 * B_pad * (S * H_pad + H_pad * H_pad + H_pad * A_mxu)
    bytes_accessed = (x_p.size * 4
                      + (prepped["w1"].size + prepped["w2"].size
                         + prepped["w3"].size) * 2
                      + (prepped["b1"].size + prepped["b2"].size
                         + prepped["b3"].size) * 4
                      + B_pad * A_store * 4)

    out = pl.pallas_call(
        mlp_kernel,
        out_shape=jax.ShapeDtypeStruct((B_pad, A_store), jnp.float32),
        grid_spec=pltpu.PrefetchScalarGridSpec(
            num_scalar_prefetch=0,
            grid=grid,
            in_specs=[
                # streamed activation tile (f32; cast to bf16 in-kernel)
                pl.BlockSpec((TB, S), lambda i: (i, 0)),
                # weights / biases: constant index_map -> VMEM-resident
                pl.BlockSpec((S, H_pad), lambda i: (0, 0)),
                pl.BlockSpec((1, H_pad), lambda i: (0, 0)),
                pl.BlockSpec((H_pad, H_pad), lambda i: (0, 0)),
                pl.BlockSpec((1, H_pad), lambda i: (0, 0)),
                pl.BlockSpec((H_pad, A_mxu), lambda i: (0, 0)),
                pl.BlockSpec((1, A_store), lambda i: (0, 0)),
            ],
            # narrow (TB, 8) f32 output slab -> ~16x less HBM writeback
            out_specs=pl.BlockSpec((TB, A_store), lambda i: (i, 0)),
        ),
        compiler_params=pltpu.CompilerParams(
            dimension_semantics=("parallel",),
        ),
        cost_estimate=pl.CostEstimate(
            flops=flops, transcendentals=0, bytes_accessed=bytes_accessed),
    )(x_p, prepped["w1"], prepped["b1"], prepped["w2"], prepped["b2"],
      prepped["w3"], prepped["b3"])

    return out[:B, :A]


def init_params(key, num_states, num_actions, hidden=200):
    """Mimics PyTorch nn.Linear default init:
    uniform(-1/sqrt(fan_in), 1/sqrt(fan_in)) for weight and bias."""
    keys = jax.random.split(key, 6)

    def linear(kw, kb, fan_in, fan_out):
        bound = 1.0 / math.sqrt(fan_in)
        # stored as [in, out] (transpose of PyTorch layout)
        w = jax.random.uniform(kw, (fan_in, fan_out), jnp.float32, -bound, bound)
        b = jax.random.uniform(kb, (fan_out,), jnp.float32, -bound, bound)
        return w, b

    w1, b1 = linear(keys[0], keys[1], num_states, hidden)
    w2, b2 = linear(keys[2], keys[3], hidden, hidden)
    w3, b3 = linear(keys[4], keys[5], hidden, num_actions)
    return {"w1": w1, "b1": b1, "w2": w2, "b2": b2, "w3": w3, "b3": b3}


def reference_forward(x, p):
    h1 = jnp.maximum(x @ p["w1"] + p["b1"], 0.0)
    h2 = jnp.maximum(h1 @ p["w2"] + p["b2"], 0.0)
    return h2 @ p["w3"] + p["b3"]


if __name__ == "__main__":
    num_states = 16
    num_actions = 4

    key = jax.random.PRNGKey(0)
    k_x, k_x2, k_p = jax.random.split(key, 3)

    params = init_params(k_p, num_states, num_actions)
    prepped, dims = prepare_params(params)   # one-time pad/cast

    # Small batch (single tile path).
    batch = 2
    x = jax.random.normal(k_x, (batch, num_states), dtype=jnp.float32)
    out = jax.block_until_ready(fully_connected_policy_estimator(x, prepped, dims))
    ref = reference_forward(x, params)
    assert out.shape == (batch, num_actions), out.shape
    # bf16 MXU inputs -> loosened tolerance vs the f32 reference.
    assert jnp.allclose(out, ref, atol=5e-2, rtol=5e-2), (out, ref)

    # Medium batch (exercises the adaptive multi-tile / parallel-grid path).
    batch2 = 100
    x2 = jax.random.normal(k_x2, (batch2, num_states), dtype=jnp.float32)
    out2 = jax.block_until_ready(fully_connected_policy_estimator(x2, prepped, dims))
    ref2 = reference_forward(x2, params)
    assert out2.shape == (batch2, num_actions), out2.shape
    assert jnp.allclose(out2, ref2, atol=5e-2, rtol=5e-2)

    print("KERNEL_OK")
</pallas_src>

<mosaic_0001>
module attributes {stable_mosaic.version = 11 : i64} {
  func.func @mlp_kernel(%arg0: i32, %arg1: memref<8x16xf32, #tpu.memory_space<vmem>>, %arg2: memref<16x256xbf16, #tpu.memory_space<vmem>>, %arg3: memref<1x256xf32, #tpu.memory_space<vmem>>, %arg4: memref<256x256xbf16, #tpu.memory_space<vmem>>, %arg5: memref<1x256xf32, #tpu.memory_space<vmem>>, %arg6: memref<256x128xbf16, #tpu.memory_space<vmem>>, %arg7: memref<1x8xf32, #tpu.memory_space<vmem>>, %arg8: memref<8x8xf32, #tpu.memory_space<vmem>>) attributes {dimension_semantics = [#tpu.dimension_semantics<parallel>], iteration_bounds = array<i64: 1>, scalar_prefetch = 0 : i64, scratch_operands = 0 : i64, tpu.core_type = #tpu.core_type<tc>, window_params = [{transform_indices = @transform_0, window_bounds = array<i64: 8, 16>}, {pipeline_mode = #tpu.pipeline_mode<synchronous>, transform_indices = @transform_1, window_bounds = array<i64: 16, 256>}, {pipeline_mode = #tpu.pipeline_mode<synchronous>, transform_indices = @transform_2, window_bounds = array<i64: 1, 256>}, {pipeline_mode = #tpu.pipeline_mode<synchronous>, transform_indices = @transform_3, window_bounds = array<i64: 256, 256>}, {pipeline_mode = #tpu.pipeline_mode<synchronous>, transform_indices = @transform_4, window_bounds = array<i64: 1, 256>}, {pipeline_mode = #tpu.pipeline_mode<synchronous>, transform_indices = @transform_5, window_bounds = array<i64: 256, 128>}, {pipeline_mode = #tpu.pipeline_mode<synchronous>, transform_indices = @transform_6, window_bounds = array<i64: 1, 8>}, {transform_indices = @transform_7, window_bounds = array<i64: 8, 8>}]} {
    %c0 = arith.constant 0 : index
    %c0_0 = arith.constant 0 : index
    %0 = vector.load %arg1[%c0, %c0_0] : memref<8x16xf32, #tpu.memory_space<vmem>>, vector<8x16xf32>
    %1 = arith.truncf %0 : vector<8x16xf32> to vector<8x16xbf16>
    %c0_1 = arith.constant 0 : index
    %c0_2 = arith.constant 0 : index
    %2 = vector.load %arg2[%c0_1, %c0_2] : memref<16x256xbf16, #tpu.memory_space<vmem>>, vector<16x256xbf16>
    %cst = arith.constant dense<0.000000e+00> : vector<8x256xf32>
    %3 = tpu.matmul %1, %2, %cst {dimension_numbers = #tpu.dot_dimension_numbers<[1], [0], [0], [1], [0, 0, 1, 1], [], []>} : vector<8x16xbf16>, vector<16x256xbf16>, vector<8x256xf32> -> vector<8x256xf32>
    %c0_3 = arith.constant 0 : index
    %c0_4 = arith.constant 0 : index
    %4 = vector.load %arg3[%c0_3, %c0_4] : memref<1x256xf32, #tpu.memory_space<vmem>>, vector<1x256xf32>
    %5 = vector.broadcast %4 : vector<1x256xf32> to vector<8x256xf32>
    %6 = arith.addf %3, %5 : vector<8x256xf32>
    %cst_5 = arith.constant 0.000000e+00 : f32
    %7 = vector.broadcast %cst_5 : f32 to vector<8x256xf32>
    %8 = arith.maximumf %6, %7 : vector<8x256xf32>
    %9 = arith.truncf %8 : vector<8x256xf32> to vector<8x256xbf16>
    %c0_6 = arith.constant 0 : index
    %c0_7 = arith.constant 0 : index
    %10 = vector.load %arg4[%c0_6, %c0_7] : memref<256x256xbf16, #tpu.memory_space<vmem>>, vector<256x256xbf16>
    %cst_8 = arith.constant dense<0.000000e+00> : vector<8x256xf32>
    %11 = tpu.matmul %9, %10, %cst_8 {dimension_numbers = #tpu.dot_dimension_numbers<[1], [0], [0], [1], [0, 0, 1, 1], [], []>} : vector<8x256xbf16>, vector<256x256xbf16>, vector<8x256xf32> -> vector<8x256xf32>
    %c0_9 = arith.constant 0 : index
    %c0_10 = arith.constant 0 : index
    %12 = vector.load %arg5[%c0_9, %c0_10] : memref<1x256xf32, #tpu.memory_space<vmem>>, vector<1x256xf32>
    %13 = vector.broadcast %12 : vector<1x256xf32> to vector<8x256xf32>
    %14 = arith.addf %11, %13 : vector<8x256xf32>
    %cst_11 = arith.constant 0.000000e+00 : f32
    %15 = vector.broadcast %cst_11 : f32 to vector<8x256xf32>
    %16 = arith.maximumf %14, %15 : vector<8x256xf32>
    %17 = arith.truncf %16 : vector<8x256xf32> to vector<8x256xbf16>
    %c0_12 = arith.constant 0 : index
    %c0_13 = arith.constant 0 : index
    %18 = vector.load %arg6[%c0_12, %c0_13] : memref<256x128xbf16, #tpu.memory_space<vmem>>, vector<256x128xbf16>
    %cst_14 = arith.constant dense<0.000000e+00> : vector<8x128xf32>
    %19 = tpu.matmul %17, %18, %cst_14 {dimension_numbers = #tpu.dot_dimension_numbers<[1], [0], [0], [1], [0, 0, 1, 1], [], []>} : vector<8x256xbf16>, vector<256x128xbf16>, vector<8x128xf32> -> vector<8x128xf32>
    %20 = vector.extract_strided_slice %19 {offsets = [0, 0], sizes = [8, 8], strides = [1, 1]} : vector<8x128xf32> to vector<8x8xf32>
    %c0_15 = arith.constant 0 : index
    %c0_16 = arith.constant 0 : index
    %21 = vector.load %arg7[%c0_15, %c0_16] : memref<1x8xf32, #tpu.memory_space<vmem>>, vector<1x8xf32>
    %22 = vector.broadcast %21 : vector<1x8xf32> to vector<8x8xf32>
    %23 = arith.addf %20, %22 : vector<8x8xf32>
    %c0_17 = arith.constant 0 : index
    %c0_18 = arith.constant 0 : index
    %24 = vector.load %arg8[%c0_17, %c0_18] : memref<8x8xf32, #tpu.memory_space<vmem>>, vector<8x8xf32>
    tpu.vector_store %arg8[%c0_17, %c0_18], %23 {strides = array<i32>} : memref<8x8xf32, #tpu.memory_space<vmem>>, vector<8x8xf32>,
    return
  }
  func.func @transform_0(%arg0: i32) -> (i32, i32) {
    %c0_i32 = arith.constant 0 : i32
    %c0_i32_0 = arith.constant 0 : i32
    return %arg0, %c0_i32 : i32, i32
  }
  func.func @transform_1(%arg0: i32) -> (i32, i32) {
    %c0_i32 = arith.constant 0 : i32
    %c0_i32_0 = arith.constant 0 : i32
    %c0_i32_1 = arith.constant 0 : i32
    return %c0_i32, %c0_i32_0 : i32, i32
  }
  func.func @transform_2(%arg0: i32) -> (i32, i32) {
    %c0_i32 = arith.constant 0 : i32
    %c0_i32_0 = arith.constant 0 : i32
    %c0_i32_1 = arith.constant 0 : i32
    return %c0_i32, %c0_i32_0 : i32, i32
  }
  func.func @transform_3(%arg0: i32) -> (i32, i32) {
    %c0_i32 = arith.constant 0 : i32
    %c0_i32_0 = arith.constant 0 : i32
    %c0_i32_1 = arith.constant 0 : i32
    return %c0_i32, %c0_i32_0 : i32, i32
  }
  func.func @transform_4(%arg0: i32) -> (i32, i32) {
    %c0_i32 = arith.constant 0 : i32
    %c0_i32_0 = arith.constant 0 : i32
    %c0_i32_1 = arith.constant 0 : i32
    return %c0_i32, %c0_i32_0 : i32, i32
  }
  func.func @transform_5(%arg0: i32) -> (i32, i32) {
    %c0_i32 = arith.constant 0 : i32
    %c0_i32_0 = arith.constant 0 : i32
    %c0_i32_1 = arith.constant 0 : i32
    return %c0_i32, %c0_i32_0 : i32, i32
  }
  func.func @transform_6(%arg0: i32) -> (i32, i32) {
    %c0_i32 = arith.constant 0 : i32
    %c0_i32_0 = arith.constant 0 : i32
    %c0_i32_1 = arith.constant 0 : i32
    return %c0_i32, %c0_i32_0 : i32, i32
  }
  func.func @transform_7(%arg0: i32) -> (i32, i32) {
    %c0_i32 = arith.constant 0 : i32
    %c0_i32_0 = arith.constant 0 : i32
    return %arg0, %c0_i32 : i32, i32
  }
}

</mosaic_0001>

<bundles_post_ra>
// kernel: tpu_custom_call.1
= control target key start
LH: loop header
LB: loop body
LE: loop exit
PB: predicated region body
PF: predicated region fallthrough
CT: control target
= control target key end

     0   :  { %12 = vsyncpa [#allocation3], 0  ;;  %s994_s0 = inlined_call_operand.hbm [shape: f32[8,16], index: 0, kind: input, shape index: {}]   ;;  %s995_s1 = inlined_call_operand.hbm [shape: bf16[16,256], index: 1, kind: input, shape index: {}]   ;;  %s996_s2 = inlined_call_operand.vmem [shape: f32[1,256], index: 2, kind: input, shape index: {}]   ;;  %s997_s3 = inlined_call_operand.hbm [shape: bf16[256,256], index: 3, kind: input, shape index: {}]   ;;  %s998_s4 = inlined_call_operand.vmem [shape: f32[1,256], index: 4, kind: input, shape index: {}]   ;;  %s999_s5 = inlined_call_operand.hbm [shape: bf16[256,128], index: 5, kind: input, shape index: {}]   ;;  %s1000_s6 = inlined_call_operand.vmem [shape: f32[1,8], index: 6, kind: input, shape index: {}]   ;;  %s1001_s7 = inlined_call_operand.hbm [shape: f32[8,8], index: 7, kind: output, shape index: {}]  }
   0x1   :  { %13 = vsyncpa [#allocation6], 0 }
   0x2   :  { %14 = vsyncpa [#allocation9], 0 }
   0x3   :  { %15 = vsyncpa [#allocation4], 0  ;;  %s869_s24 = smov [#allocation5]   ;;  %s751_s28 = scalar_lea.hbm %s995_s1, 256 }
   0x4   :  { %s31_s25 = sshll.u32 %s869_s24, 4  ;;  %p752_p0 = scmp.ne.s32.totalorder %s995_s1, %s751_s28  ;;  %s32_s25 = int_to_ptr.vmem [resolvable:$true] %s31_s25 }
   0x5   :  { %p755_p1 = scmp.lt.u32.totalorder %s751_s28, %s995_s1 }
   0x7   :  { %p757_p2 = pnand %p755_p1, %p752_p0 }
   0x9   :  { %760 = shalt.err (!%p757_p2)
}
   0xa   :  { %s761_s10 = scalar_lea.vmem %s32_s25, 256  ;;  %p766_p4 = scmp.lt.s32.totalorder %s32_s25, %s32_s25 }
   0xb   :  { %p762_p3 = scmp.ne.s32.totalorder %s32_s25, %s761_s10  ;;  %p767_p5 = scmp.lt.s32.totalorder %s761_s10, %s761_s10 }
   0xd   :  { %p768_p6 = por %p767_p5, %p766_p4 }
   0xf   :  { %p769_p7 = pnand %p768_p6, %p762_p3 }
  0x11   :  { %772 = shalt.err (!%p769_p7)
}
  0x12   :  { %s870_s11 = smov 128   ;;  %s871_s12 = smov 8  }
  0x13   :  { %37 = dma.hbm_to_vmem [thread:$0]  %s995_s1, 256, %s32_s25, [#allocation6], %s870_s11, %s870_s11, %s871_s12  }
  0x14   :  { %s872_s15 = smov [#allocation2]   ;;  %s873_s17 = smov [#allocation7]  }
  0x15   :  { %s22_s16 = sshll.u32 %s872_s15, 4  ;;  %s45_s18 = sshll.u32 %s873_s17, 4  ;;  %s23_s16 = int_to_ptr.vmem [resolvable:$true] %s22_s16  ;;  %s46_s18 = int_to_ptr.vmem [resolvable:$true] %s45_s18 }
  0x16   :  { %s773_s21 = scalar_lea.hbm %s994_s0, 128 }
  0x17   :  { %p774_p8 = scmp.ne.s32.totalorder %s994_s0, %s773_s21  ;;  %p777_p9 = scmp.lt.u32.totalorder %s773_s21, %s994_s0 }
  0x19   :  { %p779_p10 = pnand %p777_p9, %p774_p8 }
  0x1b   :  { %782 = shalt.err (!%p779_p10)
}
  0x1c   :  { %s783_s1 = scalar_lea.vmem %s23_s16, 128  ;;  %p788_p12 = scmp.lt.s32.totalorder %s23_s16, %s23_s16 }
  0x1d   :  { %p784_p11 = scmp.ne.s32.totalorder %s23_s16, %s783_s1  ;;  %p789_p13 = scmp.lt.s32.totalorder %s783_s1, %s783_s1 }
  0x1f   :  { %p790_p0 = por %p789_p13, %p788_p12 }
  0x21   :  { %p791_p1 = pnand %p790_p0, %p784_p11 }
  0x23   :  { %794 = shalt.err (!%p791_p1)
}
  0x24   :  { %25 = dma.hbm_to_vmem [thread:$0]  %s994_s0, 128, %s23_s16, [#allocation3]  }
  0x25   :  { %s795_s30 = scalar_lea.hbm %s997_s3, 4096 }
  0x26   :  { %p796_p2 = scmp.ne.s32.totalorder %s997_s3, %s795_s30  ;;  %p799_p3 = scmp.lt.u32.totalorder %s795_s30, %s997_s3 }
  0x28   :  { %p801_p4 = pnand %p799_p3, %p796_p2 }
  0x2a   :  { %804 = shalt.err (!%p801_p4)
}
  0x2b   :  { %s805_s14 = scalar_lea.vmem %s46_s18, 4096  ;;  %p810_p6 = scmp.lt.s32.totalorder %s46_s18, %s46_s18 }
  0x2c   :  { %p806_p5 = scmp.ne.s32.totalorder %s46_s18, %s805_s14  ;;  %p811_p7 = scmp.lt.s32.totalorder %s805_s14, %s805_s14 }
  0x2e   :  { %p812_p8 = por %p811_p7, %p810_p6 }
  0x30   :  { %p813_p9 = pnand %p812_p8, %p806_p5 }
  0x32   :  { %816 = shalt.err (!%p813_p9)
}
  0x33   :  { %51 = dma.hbm_to_vmem [thread:$0]  %s997_s3, 4096, %s46_s18, [#allocation6], %s870_s11, %s870_s11, %s871_s12  }
  0x34   :  { %s874_s16 = smov [#allocation8]   ;;  %s817_s21 = scalar_lea.hbm %s999_s5, 2048 }
  0x35   :  { %s59_s17 = sshll.u32 %s874_s16, 4  ;;  %p818_p10 = scmp.ne.s32.totalorder %s999_s5, %s817_s21  ;;  %s60_s17 = int_to_ptr.vmem [resolvable:$true] %s59_s17 }
  0x36   :  { %p821_p11 = scmp.lt.u32.totalorder %s817_s21, %s999_s5 }
  0x38   :  { %p823_p12 = pnand %p821_p11, %p818_p10 }
  0x3a   :  { %826 = shalt.err (!%p823_p12)
}
  0x3b   :  { %s827_s1 = scalar_lea.vmem %s60_s17, 2048  ;;  %p832_p0 = scmp.lt.s32.totalorder %s60_s17, %s60_s17 }
  0x3c   :  { %p828_p13 = scmp.ne.s32.totalorder %s60_s17, %s827_s1  ;;  %p833_p1 = scmp.lt.s32.totalorder %s827_s1, %s827_s1 }
  0x3e   :  { %p834_p2 = por %p833_p1, %p832_p0 }
  0x40   :  { %p835_p3 = pnand %p834_p2, %p828_p13 }
  0x42   :  { %838 = shalt.err (!%p835_p3)
}
  0x43   :  { %s875_s3 = smov 64   ;;  %s876_s11 = smov 4  }
  0x44   :  { %65 = dma.hbm_to_vmem [thread:$0]  %s999_s5, 2048, %s60_s17, [#allocation9], %s875_s3, %s875_s3, %s876_s11  }
  0x45   :  { %861 = dma.done.wait [#allocation3], 128  }
  0x46   :  { %862 = vsyncadd [#allocation3], 4294967168 }
  0x47   :  { %863 = dma.done.wait [#allocation6], 4352  }
  0x48   :  { %864 = vsyncadd [#allocation6], 4294962944 }
  0x49   :  { %865 = dma.done.wait [#allocation9], 2048  }
  0x4a   :  { %866 = vsyncadd [#allocation9], 4294965248  ;;  %v877_v0 = vmov 0   ;;  %v684_v1 = vld [vmem:[#allocation5 + $0x4] ss:$8 sps:$4 sm:$0xff]   ;;  %v81_v3 = vld [vmem:[#allocation2] sm:$0xff]  ;;  %v87_v49 = vlaneseq }
  0x4b   :  { %143 = vmatprep.mubr.bf16.mxu0 %v877_v0  ;;  %v686_v2 = vld [vmem:[#allocation5] ss:$8 sps:$4 sm:$0xff]   ;;  %111 = vmatprep.subr.bf16.mxu0 %v684_v1  ;;  %v82_v4 = vpack.c.bf16 %v81_v3, %v81_v3  ;;  %v687_v5 = vld [vmem:[#allocation7 + $0x4] ss:$8 sps:$4 sm:$0xff]   ;;  %v689_v6 = vld [vmem:[#allocation7] ss:$8 sps:$4 sm:$0xff]  }
  0x4c   :  { %112 = vmatpush1.bf16.msra.mxu0 %v686_v2  ;;  %vm107_vm0 = vcmask 130048   ;;  %v690_v7 = vld [vmem:[#allocation7 + $0x14] ss:$8 sps:$4 sm:$0xff]   ;;  %360 = vmatprep.subr.bf16.mxu1 %v687_v5  ;;  %v692_v8 = vld [vmem:[#allocation7 + $0x10] ss:$8 sps:$4 sm:$0xff]   ;;  %v735_v37 = vld [vmem:[#allocation8 + $0x40] sm:$0xff]  }
  0x4d   :  { %361 = vmatpush1.bf16.msra.mxu1 %v689_v6  ;;  %v693_v9 = vld [vmem:[#allocation7 + $0x24] ss:$8 sps:$4 sm:$0xff]   ;;  %v695_v10 = vld [vmem:[#allocation7 + $0x20] ss:$8 sps:$4 sm:$0xff]   ;;  %v696_v11 = vld [vmem:[#allocation7 + $0x34] ss:$8 sps:$4 sm:$0xff]   ;;  %652 = vmatprep.subr.bf16.mxu0 %v735_v37 }
  0x4e   :  { %362 = vmatprep.subr.bf16.mxu1 %v690_v7  ;;  %v698_v12 = vld [vmem:[#allocation7 + $0x30] ss:$8 sps:$4 sm:$0xff]   ;;  %v699_v13 = vld [vmem:[#allocation7 + $0x44] ss:$8 sps:$4 sm:$0xff]   ;;  %v701_v14 = vld [vmem:[#allocation7 + $0x40] ss:$8 sps:$4 sm:$0xff]  }
  0x4f   :  { %602 = vmatmul.mubr.msk.bf16.vlgmr.msra.gmra.mrb[0].mxu0 %vm107_vm0, %v82_v4  ;;  %v702_v15 = vld [vmem:[#allocation7 + $0x54] ss:$8 sps:$4 sm:$0xff]   ;;  %v704_v16 = vld [vmem:[#allocation7 + $0x50] ss:$8 sps:$4 sm:$0xff]   ;;  %v705_v17 = vld [vmem:[#allocation7 + $0x64] ss:$8 sps:$4 sm:$0xff]  }
  0x50   :  { %v707_v18 = vld [vmem:[#allocation7 + $0x60] ss:$8 sps:$4 sm:$0xff]   ;;  %v708_v19 = vld [vmem:[#allocation7 + $0x74] ss:$8 sps:$4 sm:$0xff]   ;;  %v710_v20 = vld [vmem:[#allocation7 + $0x70] ss:$8 sps:$4 sm:$0xff]  }
  0x51   :  { %363 = vmatpush1.bf16.msra.mxu1 %v692_v8  ;;  %v711_v21 = vld [vmem:[#allocation7 + $0x84] ss:$8 sps:$4 sm:$0xff]   ;;  %v713_v22 = vld [vmem:[#allocation7 + $0x80] ss:$8 sps:$4 sm:$0xff]   ;;  %v714_v23 = vld [vmem:[#allocation7 + $0x94] ss:$8 sps:$4 sm:$0xff]  }
  0x52   :  { %364 = vmatprep.subr.bf16.mxu1 %v693_v9  ;;  %v716_v24 = vld [vmem:[#allocation7 + $0x90] ss:$8 sps:$4 sm:$0xff]   ;;  %v717_v25 = vld [vmem:[#allocation7 + $0xa4] ss:$8 sps:$4 sm:$0xff]   ;;  %v719_v26 = vld [vmem:[#allocation7 + $0xa0] ss:$8 sps:$4 sm:$0xff]  }
  0x53   :  { %v720_v27 = vld [vmem:[#allocation7 + $0xb4] ss:$8 sps:$4 sm:$0xff]   ;;  %v722_v28 = vld [vmem:[#allocation7 + $0xb0] ss:$8 sps:$4 sm:$0xff]   ;;  %v723_v29 = vld [vmem:[#allocation7 + $0xc4] ss:$8 sps:$4 sm:$0xff]  }
  0x54   :  { %v725_v30 = vld [vmem:[#allocation7 + $0xc0] ss:$8 sps:$4 sm:$0xff]   ;;  %v726_v31 = vld [vmem:[#allocation7 + $0xd4] ss:$8 sps:$4 sm:$0xff]   ;;  %v728_v32 = vld [vmem:[#allocation7 + $0xd0] ss:$8 sps:$4 sm:$0xff]  }
  0x55   :  { %365 = vmatpush1.bf16.msra.mxu1 %v695_v10  ;;  %v729_v33 = vld [vmem:[#allocation7 + $0xe4] ss:$8 sps:$4 sm:$0xff]   ;;  %v731_v34 = vld [vmem:[#allocation7 + $0xe0] ss:$8 sps:$4 sm:$0xff]   ;;  %v732_v35 = vld [vmem:[#allocation7 + $0xf4] ss:$8 sps:$4 sm:$0xff]  }
  0x56   :  { %366 = vmatprep.subr.bf16.mxu1 %v696_v11  ;;  %v734_v36 = vld [vmem:[#allocation7 + $0xf0] ss:$8 sps:$4 sm:$0xff]   ;;  %v736_v38 = vld [vmem:[#allocation8] sm:$0xff]   ;;  %v737_v39 = vld [vmem:[#allocation8 + $0x48] sm:$0xff]   ;;  %v88_v50 = vshrl.u32 %v87_v49, 7  ;;  %vm581_vm1 = vcmask 64512  }
  0x57   :  { %653 = vmatpush3.bf16.msra.mxu0 %v736_v38  ;;  %v738_v40 = vld [vmem:[#allocation8 + $0x8] sm:$0xff]   ;;  %v739_v41 = vld [vmem:[#allocation8 + $0x50] sm:$0xff]   ;;  %v741_v43 = vld [vmem:[#allocation8 + $0x58] sm:$0xff]  }
  0x58   :  { %654 = vmatprep.subr.bf16.mxu0 %v737_v39  ;;  %v740_v42 = vld [vmem:[#allocation8 + $0x10] sm:$0xff]   ;;  %v742_v44 = vld [vmem:[#allocation8 + $0x18] sm:$0xff]   ;;  %v743_v45 = vld [vmem:[#allocation8 + $0x60] sm:$0xff]   ;;  %v89_v51 = vsub.s32 0, %v88_v50  ;;  %v93_v53 = vsub.s32 1, %v88_v50 }
  0x59   :  { %367 = vmatpush1.bf16.msra.mxu1 %v698_v12  ;;  %v744_v46 = vld [vmem:[#allocation8 + $0x20] sm:$0xff]   ;;  %v745_v47 = vld [vmem:[#allocation8 + $0x68] sm:$0xff]   ;;  %v747_v2 = vld [vmem:[#allocation8 + $0x70] sm:$0xff]  }
  0x5a   :  { %368 = vmatprep.subr.bf16.mxu1 %v699_v13  ;;  %v746_v48 = vld [vmem:[#allocation8 + $0x28] sm:$0xff]   ;;  %v748_v3 = vld [vmem:[#allocation8 + $0x30] sm:$0xff]   ;;  %v749_v4 = vld [vmem:[#allocation8 + $0x78] sm:$0xff]  }
  0x5b   :  { %655 = vmatpush3.bf16.msra.mxu0 %v738_v40  ;;  %v85_v52 = vld [vmem:[%s996_s2] sm:$0x3]  ;;  %v750_v5 = vld [vmem:[#allocation8 + $0x38] sm:$0xff]  }
  0x5c   :  { %656 = vmatprep.subr.bf16.mxu0 %v739_v41  ;;  %v90_v54 = vrot.slane %v85_v52, %v89_v51  ;;  %v94_v55 = vrot.slane %v85_v52, %v93_v53  ;;  %v188_v6 = vld [vmem:[%s998_s4] sm:$0x3]  ;;  %s878_s4 = smov [#allocation10]  }
  0x5d   :  { %369 = vmatpush1.bf16.msra.mxu1 %v701_v14  ;;  %v193_v7 = vrot.slane %v188_v6, %v89_v51  ;;  %v197_v8 = vrot.slane %v188_v6, %v93_v53  ;;  %s589_s30 = sshll.u32 %s878_s4, 4  ;;  %s590_s30 = int_to_ptr.vmem [resolvable:$true] %s589_s30 }
  0x5e   :  { %370 = vmatprep.subr.bf16.mxu1 %v702_v15  ;;  %s839_s8 = scalar_lea.vmem %s590_s30, 128  ;;  %p844_p5 = scmp.lt.s32.totalorder %s590_s30, %s590_s30 }
  0x5f   :  { %657 = vmatpush3.bf16.msra.mxu0 %v740_v42  ;;  %p840_p4 = scmp.ne.s32.totalorder %s590_s30, %s839_s8  ;;  %p845_p6 = scmp.lt.s32.totalorder %s839_s8, %s839_s8 }
  0x60   :  { %658 = vmatprep.subr.bf16.mxu0 %v741_v43 }
  0x61   :  { %371 = vmatpush1.bf16.msra.mxu1 %v704_v16  ;;  %p846_p7 = por %p845_p6, %p844_p5 }
  0x62   :  { %372 = vmatprep.subr.bf16.mxu1 %v705_v17 }
  0x63   :  { %659 = vmatpush3.bf16.msra.mxu0 %v742_v44  ;;  %p847_p8 = pnand %p846_p7, %p840_p4 }
  0x64   :  { %660 = vmatprep.subr.bf16.mxu0 %v743_v45 }
  0x65   :  { %373 = vmatpush1.bf16.msra.mxu1 %v707_v18 }
  0x66   :  { %374 = vmatprep.subr.bf16.mxu1 %v708_v19 }
  0x67   :  { %661 = vmatpush3.bf16.msra.mxu0 %v744_v46 }
  0x68   :  { %662 = vmatprep.subr.bf16.mxu0 %v745_v47 }
  0x69   :  { %375 = vmatpush1.bf16.msra.mxu1 %v710_v20 }
  0x6a   :  { %376 = vmatprep.subr.bf16.mxu1 %v711_v21  ;;  %v651_v21 = vld [vmem:[%s1000_s6] ss:$0 sm:$0xff] }
  0x6b   :  { %663 = vmatpush3.bf16.msra.mxu0 %v746_v48 }
  0x6c   :  { %664 = vmatprep.subr.bf16.mxu0 %v747_v2 }
  0x6d   :  { %377 = vmatpush1.bf16.msra.mxu1 %v713_v22 }
  0x6e   :  { %378 = vmatprep.subr.bf16.mxu1 %v714_v23 }
  0x6f   :  { %665 = vmatpush3.bf16.msra.mxu0 %v748_v3 }
  0x70   :  { %666 = vmatprep.subr.bf16.mxu0 %v749_v4 }
  0x71   :  { %379 = vmatpush1.bf16.msra.mxu1 %v716_v24 }
  0x72   :  { %380 = vmatprep.subr.bf16.mxu1 %v717_v25 }
  0x73   :  { %667 = vmatpush3.bf16.msra.mxu0 %v750_v5 }
  0x75   :  { %381 = vmatpush1.bf16.msra.mxu1 %v719_v26 }
  0x76   :  { %382 = vmatprep.subr.bf16.mxu1 %v720_v27 }
  0x79   :  { %383 = vmatpush1.bf16.msra.mxu1 %v722_v28 }
  0x7a   :  { %384 = vmatprep.subr.bf16.mxu1 %v723_v29 }
  0x7d   :  { %385 = vmatpush1.bf16.msra.mxu1 %v725_v30 }
  0x7e   :  { %386 = vmatprep.subr.bf16.mxu1 %v726_v31 }
  0x81   :  { %387 = vmatpush1.bf16.msra.mxu1 %v728_v32 }
  0x82   :  { %388 = vmatprep.subr.bf16.mxu1 %v729_v33 }
  0x85   :  { %389 = vmatpush1.bf16.msra.mxu1 %v731_v34 }
  0x86   :  { %390 = vmatprep.subr.bf16.mxu1 %v732_v35 }
  0x89   :  { %391 = vmatpush1.bf16.msra.mxu1 %v734_v36 }
 0x122   :  { %v145_v56 = vpop.f32.mrb[0].mxu0 }
 0x123   :  { %v146_v57 = vadd.f32 %v145_v56, %v90_v54  ;;  %v147_v58 = vpop.f32.mrb[1].mxu0 }
 0x124   :  { %v148_v59 = vadd.f32 %v147_v58, %v94_v55  ;;  %v149_v60 = vpop.f32.mrb[2].mxu0 }
 0x125   :  { %v152_v61 = vmax.f32 %v146_v57, 0.0  ;;  %v150_v62 = vpop.f32.mrb[3].mxu0 }
 0x126   :  { %v153_v63 = vmax.f32 %v148_v59, 0.0 }
 0x127   :  { %v154_v1 = vpack.c.bf16 %v152_v61, %v152_v61 }
 0x128   :  { %v155_v0 = vpack.c.bf16 %v153_v63, %v153_v63 }
 0x12a   :  { %392 = vmatprep.mubr.bf16.mxu1 %v155_v0 }
 0x12b   :  { %393 = vmatmul.mubr.bf16.vlgmr.msra.gmra.mrb[0].mxu1 %v154_v1 }
 0x1fe   :  { %v394_v9 = vpop.f32.mrb[0].mxu1 }
 0x1ff   :  { %v395_v10 = vadd.f32 %v394_v9, %v193_v7  ;;  %v396_v11 = vpop.f32.mrb[1].mxu1 }
 0x200   :  { %v397_v12 = vadd.f32 %v396_v11, %v197_v8  ;;  %v398_v13 = vpop.f32.mrb[2].mxu1 }
 0x201   :  { %v401_v14 = vmax.f32 %v395_v10, 0.0  ;;  %v399_v15 = vpop.f32.mrb[3].mxu1 }
 0x202   :  { %v402_v16 = vmax.f32 %v397_v12, 0.0 }
 0x203   :  { %v403_v18 = vpack.c.bf16 %v401_v14, %v401_v14 }
 0x204   :  { %v404_v17 = vpack.c.bf16 %v402_v16, %v402_v16 }
 0x206   :  { %565 = vmatprep.mubr.bf16.mxu0 %v404_v17 }
 0x207   :  { %566 = vmatmul.mubr.bf16.vlgmr.msra.gmra.mrb[4].mxu0 %v403_v18 }
 0x2da   :  { %v668_v19 = vpop.f32.mrb[4].mxu0 }
 0x2db   :  { %v669_v20 = vpop.f32.mrb[5].mxu0 }
 0x2dc   :  { %v670_v22 = vadd.f32 %v669_v20, %v668_v19  ;;  %v671_v23 = vpop.f32.mrb[6].mxu0 }
 0x2dd   :  { %v672_v24 = vpop.f32.mrb[7].mxu0 }
 0x2de   :  { %v580_v25 = vadd.f32 %v670_v22, %v651_v21 }
 0x2e0   :  { %582 = vst.msk [vmem:[#allocation10] sm:$0xff] %vm581_vm1, %v580_v25 }
 0x2e1   :  { %850 = shalt.err (!%p847_p8)
}
 0x2e2   :  { %s851_s6 = scalar_lea.hbm %s1001_s7, 128 }
 0x2e3   :  { %p852_p9 = scmp.ne.s32.totalorder %s1001_s7, %s851_s6  ;;  %p855_p10 = scmp.lt.u32.totalorder %s851_s6, %s1001_s7 }
 0x2e5   :  { %p857_p11 = pnand %p855_p10, %p852_p9 }
 0x2e7   :  { %860 = shalt.err (!%p857_p11)
}
 0x2e8   :  { %592 = dma.vmem_to_hbm [thread:$0]  %s590_s30, 128, %s1001_s7, [#allocation4]  }
 0x2e9   :  { %867 = dma.done.wait [#allocation4], 128  }
 0x2ea   :  { %868 = vsyncadd [#allocation4], 4294967168 }
 0x2eb   :  { %596 = vsyncpa [#allocation3], 1 }
 0x2ec   :  { %597 = vsyncpa [#allocation6], 1 }
 0x2ed   :  { %598 = vsyncpa [#allocation9], 1 }
 0x2ee   :  { %599 = vsyncpa [#allocation4], 1 }

</bundles_post_ra>
